<compile_context>
chip_gen: v7x
topology: tpu7x:2x2x1
jax: 0.10.0
libtpu: 0.0.40
codegen_flags: <defaults>
</compile_context>

<pallas_src>
import jax
import jax.numpy as jnp
from jax.experimental import pallas as pl
from jax.experimental.pallas import tpu as pltpu

LANE = 128
NUM_CLASSES = 10
IN_FEATURES = 784          # 28 * 28
NEG_LARGE = -1e30          # mask value for padded class lanes


def _round_up(n, m):
    return ((n + m - 1) // m) * m


def mlp_kernel(x_ref,
               w1_ref, b1_ref,
               w2_ref, b2_ref,
               w3_ref, b3_ref,
               w4_ref, b4_ref,
               o_ref):
    # Raw f32 activations straight from HBM; cast to bf16 in-kernel (hidden under
    # the DMA) so all matmuls run bf16 on the MXU with f32 accumulation.
    x = x_ref[...].astype(jnp.bfloat16)                               # (TB, 784)

    # fc1 + ReLU  (dropout in eval mode is identity)
    h = jnp.dot(x, w1_ref[...], preferred_element_type=jnp.float32) + b1_ref[...]
    h = jnp.maximum(h, 0.0).astype(jnp.bfloat16)                      # (TB, 128)

    # fc2 + ReLU (out padded 64 -> 128; padded lanes stay exactly 0 through ReLU)
    h = jnp.dot(h, w2_ref[...], preferred_element_type=jnp.float32) + b2_ref[...]
    h = jnp.maximum(h, 0.0).astype(jnp.bfloat16)                      # (TB, 128)

    # fc3 + ReLU (out padded 32 -> 128)
    h = jnp.dot(h, w3_ref[...], preferred_element_type=jnp.float32) + b3_ref[...]
    h = jnp.maximum(h, 0.0).astype(jnp.bfloat16)                      # (TB, 128)

    # fc4 (out padded 10 -> 128)
    logits = jnp.dot(h, w4_ref[...], preferred_element_type=jnp.float32) + b4_ref[...]

    # Mask the 118 padded class lanes out of the softmax normalization.
    lane_idx = jax.lax.broadcasted_iota(jnp.int32, logits.shape, 1)
    logits = jnp.where(lane_idx < NUM_CLASSES, logits, NEG_LARGE)

    # log_softmax over the class dim; lane-dense (TB, 128) bf16 store.
    m = jnp.max(logits, axis=-1, keepdims=True)
    shifted = logits - m
    lse = jnp.log(jnp.sum(jnp.exp(shifted), axis=-1, keepdims=True))
    o_ref[...] = (shifted - lse).astype(o_ref.dtype)


def prepare_params(params):
    """Pad weight out-dims (and hidden in-dims) to 128-lane multiples, cast weights
    to bf16.  Layout: weight (in_features, out_features), bias (out_features,).
    Layer 0 keeps K=784 (no input-feature padding needed)."""
    padded = []
    for idx, (w, b) in enumerate(params):
        fan_in, fan_out = w.shape
        in_pad = fan_in if idx == 0 else _round_up(fan_in, LANE)
        out_pad = _round_up(fan_out, LANE)
        w_p = jnp.pad(w, ((0, in_pad - fan_in), (0, out_pad - fan_out))).astype(jnp.bfloat16)
        b_p = jnp.pad(b.reshape(1, -1), ((0, 0), (0, out_pad - fan_out))).astype(jnp.float32)
        padded.append((w_p, b_p))
    return padded


def _choose_batch_tiling(B, block_b=1024):
    """Pick (tb, b_pad): tb multiple of 256 for large B (MXU rows on v6e/v7x, and a
    multiple of v5e's 128), minimum 16 rows; >= 2 grid steps for large B so v7x's
    second TensorCore gets work; over-padding kept under ~12%."""
    ALIGN = 256
    MIN_TB = 16
    if B <= ALIGN:
        tb = _round_up(max(B, 1), MIN_TB)
        return tb, tb
    tb = min(_round_up(block_b, ALIGN), _round_up((B + 1) // 2, ALIGN))
    while tb > ALIGN and (_round_up(B, tb) - B) * 8 > B:
        tb -= ALIGN
    return tb, _round_up(B, tb)


def mlp_forward(x_img, params, block_b=1024):
    """x_img: (B, 1, 28, 28) float32 -> (B, 10) float32 log-probs."""
    B = x_img.shape[0]
    x = x_img.reshape(B, -1).astype(jnp.float32)      # == torch x.view(B, -1); no pad/cast pass

    tb, b_pad = _choose_batch_tiling(B, block_b)
    if b_pad != B:
        x = jnp.pad(x, ((0, b_pad - B), (0, 0)))

    (w1, b1), (w2, b2), (w3, b3), (w4, b4) = prepare_params(params)

    grid = (b_pad // tb,)
    resident = lambda shape: pl.BlockSpec(shape, lambda i: (0, 0))    # weights: constant index_map

    out_padded = pl.pallas_call(
        mlp_kernel,
        out_shape=jax.ShapeDtypeStruct((b_pad, LANE), jnp.bfloat16),
        grid=grid,
        in_specs=[
            pl.BlockSpec((tb, IN_FEATURES), lambda i: (i, 0)),        # full 784 last dim (legal: == array dim)
            resident(w1.shape), resident(b1.shape),
            resident(w2.shape), resident(b2.shape),
            resident(w3.shape), resident(b3.shape),
            resident(w4.shape), resident(b4.shape),
        ],
        out_specs=pl.BlockSpec((tb, LANE), lambda i: (i, 0)),
        compiler_params=pltpu.CompilerParams(
            dimension_semantics=("parallel",),
            vmem_limit_bytes=24 << 20,
        ),
    )(x, w1, b1, w2, b2, w3, b3, w4, b4)

    # Slice back to the real classes; casting this tiny (B, 10) slice to f32 matches
    # the torch module's output dtype at negligible cost.
    return out_padded[:B, :NUM_CLASSES].astype(jnp.float32)


def init_params(key):
    """Deterministic init mimicking nn.Linear's uniform(-1/sqrt(fan_in), 1/sqrt(fan_in)).
    Weights stored as (in_features, out_features); biases as (out_features,)."""
    dims = [(IN_FEATURES, 128), (128, 64), (64, 32), (32, NUM_CLASSES)]
    params = []
    for (fan_in, fan_out) in dims:
        key, kw, kb = jax.random.split(key, 3)
        bound = 1.0 / jnp.sqrt(fan_in)
        w = jax.random.uniform(kw, (fan_in, fan_out), jnp.float32, -bound, bound)
        b = jax.random.uniform(kb, (fan_out,), jnp.float32, -bound, bound)
        params.append((w, b))
    return params


if __name__ == "__main__":
    key = jax.random.PRNGKey(0)
    kx, kp = jax.random.split(key)

    B = 8
    x = jax.random.normal(kx, (B, 1, 28, 28), jnp.float32)
    params = init_params(kp)

    # TODO(synk): dropout implemented in eval mode (identity); training-mode masking
    # would need pltpu.prng_seed / prng_random_bits inside the kernel.
    out = mlp_forward(x, params)
    out = jax.block_until_ready(out)

    # sanity: each row of log-probs should exp-sum to ~1 (bf16 store -> looser tol)
    row_sums = jnp.exp(out).sum(axis=-1)
    assert out.shape == (B, NUM_CLASSES)
    assert bool(jnp.all(jnp.abs(row_sums - 1.0) < 3e-2))

    print("KERNEL_OK")
</pallas_src>

<mosaic_0001>
module attributes {stable_mosaic.version = 11 : i64} {
  func.func @mlp_kernel(%arg0: i32, %arg1: memref<16x784xf32, #tpu.memory_space<vmem>>, %arg2: memref<784x128xbf16, #tpu.memory_space<vmem>>, %arg3: memref<1x128xf32, #tpu.memory_space<vmem>>, %arg4: memref<128x128xbf16, #tpu.memory_space<vmem>>, %arg5: memref<1x128xf32, #tpu.memory_space<vmem>>, %arg6: memref<128x128xbf16, #tpu.memory_space<vmem>>, %arg7: memref<1x128xf32, #tpu.memory_space<vmem>>, %arg8: memref<128x128xbf16, #tpu.memory_space<vmem>>, %arg9: memref<1x128xf32, #tpu.memory_space<vmem>>, %arg10: memref<16x128xbf16, #tpu.memory_space<vmem>>) attributes {dimension_semantics = [#tpu.dimension_semantics<parallel>], iteration_bounds = array<i64: 1>, scalar_prefetch = 0 : i64, scratch_operands = 0 : i64, tpu.core_type = #tpu.core_type<tc>, window_params = [{transform_indices = @transform_0, window_bounds = array<i64: 16, 784>}, {pipeline_mode = #tpu.pipeline_mode<synchronous>, transform_indices = @transform_1, window_bounds = array<i64: 784, 128>}, {pipeline_mode = #tpu.pipeline_mode<synchronous>, transform_indices = @transform_2, window_bounds = array<i64: 1, 128>}, {pipeline_mode = #tpu.pipeline_mode<synchronous>, transform_indices = @transform_3, window_bounds = array<i64: 128, 128>}, {pipeline_mode = #tpu.pipeline_mode<synchronous>, transform_indices = @transform_4, window_bounds = array<i64: 1, 128>}, {pipeline_mode = #tpu.pipeline_mode<synchronous>, transform_indices = @transform_5, window_bounds = array<i64: 128, 128>}, {pipeline_mode = #tpu.pipeline_mode<synchronous>, transform_indices = @transform_6, window_bounds = array<i64: 1, 128>}, {pipeline_mode = #tpu.pipeline_mode<synchronous>, transform_indices = @transform_7, window_bounds = array<i64: 128, 128>}, {pipeline_mode = #tpu.pipeline_mode<synchronous>, transform_indices = @transform_8, window_bounds = array<i64: 1, 128>}, {transform_indices = @transform_9, window_bounds = array<i64: 16, 128>}]} {
    %c0 = arith.constant 0 : index
    %c0_0 = arith.constant 0 : index
    %0 = vector.load %arg1[%c0, %c0_0] : memref<16x784xf32, #tpu.memory_space<vmem>>, vector<16x784xf32>
    %1 = arith.truncf %0 : vector<16x784xf32> to vector<16x784xbf16>
    %c0_1 = arith.constant 0 : index
    %c0_2 = arith.constant 0 : index
    %2 = vector.load %arg2[%c0_1, %c0_2] : memref<784x128xbf16, #tpu.memory_space<vmem>>, vector<784x128xbf16>
    %cst = arith.constant dense<0.000000e+00> : vector<16x128xf32>
    %3 = tpu.matmul %1, %2, %cst {dimension_numbers = #tpu.dot_dimension_numbers<[1], [0], [0], [1], [0, 0, 1, 1], [], []>} : vector<16x784xbf16>, vector<784x128xbf16>, vector<16x128xf32> -> vector<16x128xf32>
    %c0_3 = arith.constant 0 : index
    %c0_4 = arith.constant 0 : index
    %4 = vector.load %arg3[%c0_3, %c0_4] : memref<1x128xf32, #tpu.memory_space<vmem>>, vector<1x128xf32>
    %5 = vector.broadcast %4 : vector<1x128xf32> to vector<16x128xf32>
    %6 = arith.addf %3, %5 : vector<16x128xf32>
    %cst_5 = arith.constant 0.000000e+00 : f32
    %7 = vector.broadcast %cst_5 : f32 to vector<16x128xf32>
    %8 = arith.maximumf %6, %7 : vector<16x128xf32>
    %9 = arith.truncf %8 : vector<16x128xf32> to vector<16x128xbf16>
    %c0_6 = arith.constant 0 : index
    %c0_7 = arith.constant 0 : index
    %10 = vector.load %arg4[%c0_6, %c0_7] : memref<128x128xbf16, #tpu.memory_space<vmem>>, vector<128x128xbf16>
    %cst_8 = arith.constant dense<0.000000e+00> : vector<16x128xf32>
    %11 = tpu.matmul %9, %10, %cst_8 {dimension_numbers = #tpu.dot_dimension_numbers<[1], [0], [0], [1], [0, 0, 1, 1], [], []>} : vector<16x128xbf16>, vector<128x128xbf16>, vector<16x128xf32> -> vector<16x128xf32>
    %c0_9 = arith.constant 0 : index
    %c0_10 = arith.constant 0 : index
    %12 = vector.load %arg5[%c0_9, %c0_10] : memref<1x128xf32, #tpu.memory_space<vmem>>, vector<1x128xf32>
    %13 = vector.broadcast %12 : vector<1x128xf32> to vector<16x128xf32>
    %14 = arith.addf %11, %13 : vector<16x128xf32>
    %cst_11 = arith.constant 0.000000e+00 : f32
    %15 = vector.broadcast %cst_11 : f32 to vector<16x128xf32>
    %16 = arith.maximumf %14, %15 : vector<16x128xf32>
    %17 = arith.truncf %16 : vector<16x128xf32> to vector<16x128xbf16>
    %c0_12 = arith.constant 0 : index
    %c0_13 = arith.constant 0 : index
    %18 = vector.load %arg6[%c0_12, %c0_13] : memref<128x128xbf16, #tpu.memory_space<vmem>>, vector<128x128xbf16>
    %cst_14 = arith.constant dense<0.000000e+00> : vector<16x128xf32>
    %19 = tpu.matmul %17, %18, %cst_14 {dimension_numbers = #tpu.dot_dimension_numbers<[1], [0], [0], [1], [0, 0, 1, 1], [], []>} : vector<16x128xbf16>, vector<128x128xbf16>, vector<16x128xf32> -> vector<16x128xf32>
    %c0_15 = arith.constant 0 : index
    %c0_16 = arith.constant 0 : index
    %20 = vector.load %arg7[%c0_15, %c0_16] : memref<1x128xf32, #tpu.memory_space<vmem>>, vector<1x128xf32>
    %21 = vector.broadcast %20 : vector<1x128xf32> to vector<16x128xf32>
    %22 = arith.addf %19, %21 : vector<16x128xf32>
    %cst_17 = arith.constant 0.000000e+00 : f32
    %23 = vector.broadcast %cst_17 : f32 to vector<16x128xf32>
    %24 = arith.maximumf %22, %23 : vector<16x128xf32>
    %25 = arith.truncf %24 : vector<16x128xf32> to vector<16x128xbf16>
    %c0_18 = arith.constant 0 : index
    %c0_19 = arith.constant 0 : index
    %26 = vector.load %arg8[%c0_18, %c0_19] : memref<128x128xbf16, #tpu.memory_space<vmem>>, vector<128x128xbf16>
    %cst_20 = arith.constant dense<0.000000e+00> : vector<16x128xf32>
    %27 = tpu.matmul %25, %26, %cst_20 {dimension_numbers = #tpu.dot_dimension_numbers<[1], [0], [0], [1], [0, 0, 1, 1], [], []>} : vector<16x128xbf16>, vector<128x128xbf16>, vector<16x128xf32> -> vector<16x128xf32>
    %c0_21 = arith.constant 0 : index
    %c0_22 = arith.constant 0 : index
    %28 = vector.load %arg9[%c0_21, %c0_22] : memref<1x128xf32, #tpu.memory_space<vmem>>, vector<1x128xf32>
    %29 = vector.broadcast %28 : vector<1x128xf32> to vector<16x128xf32>
    %30 = arith.addf %27, %29 : vector<16x128xf32>
    %31 = tpu.iota {dimensions = array<i32: 1>} : vector<16x128xi32>
    %c10_i32 = arith.constant 10 : i32
    %32 = vector.broadcast %c10_i32 : i32 to vector<16x128xi32>
    %33 = arith.cmpi slt, %31, %32 : vector<16x128xi32>
    %cst_23 = arith.constant -1.000000e+30 : f32
    %34 = vector.broadcast %cst_23 : f32 to vector<16x128xf32>
    %35 = arith.select %33, %30, %34 : vector<16x128xi1>, vector<16x128xf32>
    %cst_24 = arith.constant dense<0xFF800000> : vector<16xf32>
    %36 = vector.multi_reduction <maximumf>, %35, %cst_24 [1] : vector<16x128xf32> to vector<16xf32>
    %37 = vector.shape_cast %36 : vector<16xf32> to vector<16x1xf32>
    %38 = vector.broadcast %37 : vector<16x1xf32> to vector<16x128xf32>
    %39 = arith.subf %35, %38 : vector<16x128xf32>
    %40 = math.exp %39 : vector<16x128xf32>
    %cst_25 = arith.constant dense<0.000000e+00> : vector<16xf32>
    %41 = vector.multi_reduction <add>, %40, %cst_25 [1] : vector<16x128xf32> to vector<16xf32>
    %42 = vector.shape_cast %41 : vector<16xf32> to vector<16x1xf32>
    %43 = math.log %42 : vector<16x1xf32>
    %44 = vector.broadcast %43 : vector<16x1xf32> to vector<16x128xf32>
    %45 = arith.subf %39, %44 : vector<16x128xf32>
    %46 = arith.truncf %45 : vector<16x128xf32> to vector<16x128xbf16>
    %c0_26 = arith.constant 0 : index
    %c0_27 = arith.constant 0 : index
    %47 = vector.load %arg10[%c0_26, %c0_27] : memref<16x128xbf16, #tpu.memory_space<vmem>>, vector<16x128xbf16>
    tpu.vector_store %arg10[%c0_26, %c0_27], %46 {strides = array<i32>} : memref<16x128xbf16, #tpu.memory_space<vmem>>, vector<16x128xbf16>,
    return
  }
  func.func @transform_0(%arg0: i32) -> (i32, i32) {
    %c0_i32 = arith.constant 0 : i32
    %c0_i32_0 = arith.constant 0 : i32
    return %arg0, %c0_i32 : i32, i32
  }
  func.func @transform_1(%arg0: i32) -> (i32, i32) {
    %c0_i32 = arith.constant 0 : i32
    %c0_i32_0 = arith.constant 0 : i32
    %c0_i32_1 = arith.constant 0 : i32
    return %c0_i32, %c0_i32_0 : i32, i32
  }
  func.func @transform_2(%arg0: i32) -> (i32, i32) {
    %c0_i32 = arith.constant 0 : i32
    %c0_i32_0 = arith.constant 0 : i32
    %c0_i32_1 = arith.constant 0 : i32
    return %c0_i32, %c0_i32_0 : i32, i32
  }
  func.func @transform_3(%arg0: i32) -> (i32, i32) {
    %c0_i32 = arith.constant 0 : i32
    %c0_i32_0 = arith.constant 0 : i32
    %c0_i32_1 = arith.constant 0 : i32
    return %c0_i32, %c0_i32_0 : i32, i32
  }
  func.func @transform_4(%arg0: i32) -> (i32, i32) {
    %c0_i32 = arith.constant 0 : i32
    %c0_i32_0 = arith.constant 0 : i32
    %c0_i32_1 = arith.constant 0 : i32
    return %c0_i32, %c0_i32_0 : i32, i32
  }
  func.func @transform_5(%arg0: i32) -> (i32, i32) {
    %c0_i32 = arith.constant 0 : i32
    %c0_i32_0 = arith.constant 0 : i32
    %c0_i32_1 = arith.constant 0 : i32
    return %c0_i32, %c0_i32_0 : i32, i32
  }
  func.func @transform_6(%arg0: i32) -> (i32, i32) {
    %c0_i32 = arith.constant 0 : i32
    %c0_i32_0 = arith.constant 0 : i32
    %c0_i32_1 = arith.constant 0 : i32
    return %c0_i32, %c0_i32_0 : i32, i32
  }
  func.func @transform_7(%arg0: i32) -> (i32, i32) {
    %c0_i32 = arith.constant 0 : i32
    %c0_i32_0 = arith.constant 0 : i32
    %c0_i32_1 = arith.constant 0 : i32
    return %c0_i32, %c0_i32_0 : i32, i32
  }
  func.func @transform_8(%arg0: i32) -> (i32, i32) {
    %c0_i32 = arith.constant 0 : i32
    %c0_i32_0 = arith.constant 0 : i32
    %c0_i32_1 = arith.constant 0 : i32
    return %c0_i32, %c0_i32_0 : i32, i32
  }
  func.func @transform_9(%arg0: i32) -> (i32, i32) {
    %c0_i32 = arith.constant 0 : i32
    %c0_i32_0 = arith.constant 0 : i32
    return %arg0, %c0_i32 : i32, i32
  }
}

</mosaic_0001>

<bundles_post_ra>
// kernel: tpu_custom_call.1
= control target key start
LH: loop header
LB: loop body
LE: loop exit
PB: predicated region body
PF: predicated region fallthrough
CT: control target
= control target key end

     0   :  { %14 = vsyncpa [#allocation3], 0  ;;  %s1764_s0 = inlined_call_operand.hbm [shape: f32[16,784], index: 0, kind: input, shape index: {}]   ;;  %s1765_s1 = inlined_call_operand.hbm [shape: bf16[784,128], index: 1, kind: input, shape index: {}]   ;;  %s1766_s2 = inlined_call_operand.vmem [shape: f32[1,128], index: 2, kind: input, shape index: {}]   ;;  %s1767_s3 = inlined_call_operand.hbm [shape: bf16[128,128], index: 3, kind: input, shape index: {}]   ;;  %s1768_s4 = inlined_call_operand.vmem [shape: f32[1,128], index: 4, kind: input, shape index: {}]   ;;  %s1769_s5 = inlined_call_operand.hbm [shape: bf16[128,128], index: 5, kind: input, shape index: {}]   ;;  %s1770_s6 = inlined_call_operand.vmem [shape: f32[1,128], index: 6, kind: input, shape index: {}]   ;;  %s1771_s7 = inlined_call_operand.hbm [shape: bf16[128,128], index: 7, kind: input, shape index: {}]   ;;  %s1772_s8 = inlined_call_operand.vmem [shape: f32[1,128], index: 8, kind: input, shape index: {}]   ;;  %s1773_s9 = inlined_call_operand.hbm [shape: bf16[16,128], index: 9, kind: output, shape index: {}]  }
   0x1   :  { %15 = vsyncpa [#allocation6], 0 }
   0x2   :  { %16 = vsyncpa [#allocation9], 0 }
   0x3   :  { %17 = vsyncpa [#allocation4], 0  ;;  %s1570_s30 = smov [#allocation5]   ;;  %s1430_s13 = scalar_lea.hbm %s1765_s1, 6272 }
   0x4   :  { %s35_s10 = sshll.u32 %s1570_s30, 4  ;;  %p1431_p0 = scmp.ne.s32.totalorder %s1765_s1, %s1430_s13  ;;  %s36_s10 = int_to_ptr.vmem [resolvable:$true] %s35_s10 }
   0x5   :  { %p1434_p1 = scmp.lt.u32.totalorder %s1430_s13, %s1765_s1 }
   0x7   :  { %p1436_p2 = pnand %p1434_p1, %p1431_p0 }
   0x9   :  { %1439 = shalt.err (!%p1436_p2)
}
   0xa   :  { %s1440_s18 = scalar_lea.vmem %s36_s10, 6272  ;;  %p1445_p4 = scmp.lt.s32.totalorder %s36_s10, %s36_s10 }
   0xb   :  { %p1441_p3 = scmp.ne.s32.totalorder %s36_s10, %s1440_s18  ;;  %p1446_p5 = scmp.lt.s32.totalorder %s1440_s18, %s1440_s18 }
   0xd   :  { %p1447_p6 = por %p1446_p5, %p1445_p4 }
   0xf   :  { %p1448_p7 = pnand %p1447_p6, %p1441_p3 }
  0x11   :  { %1451 = shalt.err (!%p1448_p7)
}
  0x12   :  { %s1571_s19 = smov 64   ;;  %s1572_s20 = smov 4  }
  0x13   :  { %41 = dma.hbm_to_vmem [thread:$0]  %s1765_s1, 6272, %s36_s10, [#allocation6], %s1571_s19, %s1571_s19, %s1572_s20  }
  0x14   :  { %s1573_s23 = smov [#allocation8]   ;;  %s1574_s25 = smov [#allocation2]  }
  0x15   :  { %s63_s24 = sshll.u32 %s1573_s23, 4  ;;  %s23_s26 = sshll.u32 %s1574_s25, 4  ;;  %s64_s24 = int_to_ptr.vmem [resolvable:$true] %s63_s24  ;;  %s24_s26 = int_to_ptr.vmem [resolvable:$true] %s23_s26 }
  0x16   :  { %s1452_s29 = scalar_lea.hbm %s1769_s5, 1024 }
  0x17   :  { %p1453_p8 = scmp.ne.s32.totalorder %s1769_s5, %s1452_s29  ;;  %p1456_p9 = scmp.lt.u32.totalorder %s1452_s29, %s1769_s5 }
  0x19   :  { %p1458_p10 = pnand %p1456_p9, %p1453_p8 }
  0x1b   :  { %1461 = shalt.err (!%p1458_p10)
}
  0x1c   :  { %s1462_s1 = scalar_lea.vmem %s64_s24, 1024  ;;  %p1467_p12 = scmp.lt.s32.totalorder %s64_s24, %s64_s24 }
  0x1d   :  { %p1463_p11 = scmp.ne.s32.totalorder %s64_s24, %s1462_s1  ;;  %p1468_p13 = scmp.lt.s32.totalorder %s1462_s1, %s1462_s1 }
  0x1f   :  { %p1469_p0 = por %p1468_p13, %p1467_p12 }
  0x21   :  { %p1470_p1 = pnand %p1469_p0, %p1463_p11 }
  0x23   :  { %1473 = shalt.err (!%p1470_p1)
}
  0x24   :  { %69 = dma.hbm_to_vmem [thread:$0]  %s1769_s5, 1024, %s64_s24, [#allocation9], %s1571_s19, %s1571_s19, %s1572_s20  }
  0x25   :  { %s1474_s17 = scalar_lea.hbm %s1764_s0, 1792 }
  0x26   :  { %p1475_p2 = scmp.ne.s32.totalorder %s1764_s0, %s1474_s17  ;;  %p1478_p3 = scmp.lt.u32.totalorder %s1474_s17, %s1764_s0 }
  0x28   :  { %p1480_p4 = pnand %p1478_p3, %p1475_p2 }
  0x2a   :  { %1483 = shalt.err (!%p1480_p4)
}
  0x2b   :  { %s1484_s25 = scalar_lea.vmem %s24_s26, 1792  ;;  %p1489_p6 = scmp.lt.s32.totalorder %s24_s26, %s24_s26 }
  0x2c   :  { %p1485_p5 = scmp.ne.s32.totalorder %s24_s26, %s1484_s25  ;;  %p1490_p7 = scmp.lt.s32.totalorder %s1484_s25, %s1484_s25 }
  0x2e   :  { %p1491_p8 = por %p1490_p7, %p1489_p6 }
  0x30   :  { %p1492_p9 = pnand %p1491_p8, %p1485_p5 }
  0x32   :  { %1495 = shalt.err (!%p1492_p9)
}
  0x33   :  { %s1575_s5 = smov 896   ;;  %s1576_s24 = smov 56  }
  0x34   :  { %29 = dma.hbm_to_vmem [thread:$0]  %s1764_s0, 1792, %s24_s26, [#allocation3], %s1575_s5, %s1575_s5, %s1576_s24  }
  0x35   :  { %s1577_s29 = smov [#allocation7]   ;;  %s1578_s11 = smov [#allocation10]  }
  0x36   :  { %s49_s30 = sshll.u32 %s1577_s29, 4  ;;  %s77_s12 = sshll.u32 %s1578_s11, 4  ;;  %s50_s30 = int_to_ptr.vmem [resolvable:$true] %s49_s30  ;;  %s78_s12 = int_to_ptr.vmem [resolvable:$true] %s77_s12 }
  0x37   :  { %s1496_s10 = scalar_lea.hbm %s1767_s3, 1024 }
  0x38   :  { %p1497_p10 = scmp.ne.s32.totalorder %s1767_s3, %s1496_s10  ;;  %p1500_p11 = scmp.lt.u32.totalorder %s1496_s10, %s1767_s3 }
  0x3a   :  { %p1502_p12 = pnand %p1500_p11, %p1497_p10 }
  0x3c   :  { %1505 = shalt.err (!%p1502_p12)
}
  0x3d   :  { %s1506_s0 = scalar_lea.vmem %s50_s30, 1024  ;;  %p1511_p0 = scmp.lt.s32.totalorder %s50_s30, %s50_s30 }
  0x3e   :  { %p1507_p13 = scmp.ne.s32.totalorder %s50_s30, %s1506_s0  ;;  %p1512_p1 = scmp.lt.s32.totalorder %s1506_s0, %s1506_s0 }
  0x40   :  { %p1513_p2 = por %p1512_p1, %p1511_p0 }
  0x42   :  { %p1514_p3 = pnand %p1513_p2, %p1507_p13 }
  0x44   :  { %1517 = shalt.err (!%p1514_p3)
}
  0x45   :  { %55 = dma.hbm_to_vmem [thread:$0]  %s1767_s3, 1024, %s50_s30, [#allocation6], %s1571_s19, %s1571_s19, %s1572_s20  }
  0x46   :  { %s1518_s23 = scalar_lea.hbm %s1771_s7, 1024 }
  0x47   :  { %p1519_p4 = scmp.ne.s32.totalorder %s1771_s7, %s1518_s23  ;;  %p1522_p5 = scmp.lt.u32.totalorder %s1518_s23, %s1771_s7 }
  0x49   :  { %p1524_p6 = pnand %p1522_p5, %p1519_p4 }
  0x4b   :  { %1527 = shalt.err (!%p1524_p6)
}
  0x4c   :  { %s1528_s28 = scalar_lea.vmem %s78_s12, 1024  ;;  %p1533_p8 = scmp.lt.s32.totalorder %s78_s12, %s78_s12 }
  0x4d   :  { %p1529_p7 = scmp.ne.s32.totalorder %s78_s12, %s1528_s28  ;;  %p1534_p9 = scmp.lt.s32.totalorder %s1528_s28, %s1528_s28 }
  0x4f   :  { %p1535_p10 = por %p1534_p9, %p1533_p8 }
  0x51   :  { %p1536_p11 = pnand %p1535_p10, %p1529_p7 }
  0x53   :  { %1539 = shalt.err (!%p1536_p11)
}
  0x54   :  { %83 = dma.hbm_to_vmem [thread:$0]  %s1771_s7, 1024, %s78_s12, [#allocation9], %s1571_s19, %s1571_s19, %s1572_s20  }
  0x55   :  { %1562 = dma.done.wait [#allocation3], 1792  }
  0x56   :  { %1563 = vsyncadd [#allocation3], 4294965504 }
  0x57   :  { %1564 = dma.done.wait [#allocation6], 7296  }
  0x58   :  { %1565 = vsyncadd [#allocation6], 4294960000 }
  0x59   :  { %1566 = dma.done.wait [#allocation9], 2048  }
  0x5a   :  { %1567 = vsyncadd [#allocation9], 4294965248  ;;  %v1349_v0 = vld [vmem:[#allocation5 + $0x40] sm:$0xff]   ;;  %v1353_v4 = vld [vmem:[#allocation5 + $0x48] sm:$0xff]   ;;  %v1579_v43 = vmov 0.0   ;;  %vm1580_vm0 = vmmov 0  }
  0x5b   :  { %v1350_v1 = vld [vmem:[#allocation5] sm:$0xff]   ;;  %1176 = vmatprep.subr.bf16.mxu0 %v1349_v0  ;;  %v1354_v5 = vld [vmem:[#allocation5 + $0x8] sm:$0xff]   ;;  %v1357_v8 = vld [vmem:[#allocation5 + $0x50] sm:$0xff]   ;;  %vm522_vm1 = vcmask 130048  }
  0x5c   :  { %v1351_v2 = vld [vmem:[#allocation5 + $0xc0] sm:$0xff]   ;;  %1177 = vmatpush3.bf16.msra.mxu0 %v1350_v1  ;;  %v1355_v6 = vld [vmem:[#allocation5 + $0xc8] sm:$0xff]   ;;  %v1358_v9 = vld [vmem:[#allocation5 + $0x10] sm:$0xff]  }
  0x5d   :  { %v1352_v3 = vld [vmem:[#allocation5 + $0x80] sm:$0xff]   ;;  %1198 = vmatprep.subr.bf16.mxu1 %v1351_v2  ;;  %1178 = vmatprep.subr.bf16.mxu0 %v1353_v4  ;;  %v1356_v7 = vld [vmem:[#allocation5 + $0x88] sm:$0xff]   ;;  %v1359_v10 = vld [vmem:[#allocation5 + $0xd0] sm:$0xff]  }
  0x5e   :  { %1199 = vmatpush3.bf16.msra.mxu1 %v1352_v3  ;;  %v1360_v11 = vld [vmem:[#allocation5 + $0x90] sm:$0xff]   ;;  %v1361_v12 = vld [vmem:[#allocation5 + $0x58] sm:$0xff]   ;;  %v1365_v16 = vld [vmem:[#allocation5 + $0x60] sm:$0xff]  }
  0x5f   :  { %1200 = vmatprep.subr.bf16.mxu1 %v1355_v6  ;;  %v1362_v13 = vld [vmem:[#allocation5 + $0x18] sm:$0xff]   ;;  %v1366_v17 = vld [vmem:[#allocation5 + $0x20] sm:$0xff]   ;;  %v1369_v20 = vld [vmem:[#allocation5 + $0x68] sm:$0xff]  }
  0x60   :  { %1179 = vmatpush3.bf16.msra.mxu0 %v1354_v5  ;;  %v1363_v14 = vld [vmem:[#allocation5 + $0xd8] sm:$0xff]   ;;  %v1367_v18 = vld [vmem:[#allocation5 + $0xe0] sm:$0xff]   ;;  %v1370_v21 = vld [vmem:[#allocation5 + $0x28] sm:$0xff]  }
  0x61   :  { %1180 = vmatprep.subr.bf16.mxu0 %v1357_v8  ;;  %v1364_v15 = vld [vmem:[#allocation5 + $0x98] sm:$0xff]   ;;  %v1368_v19 = vld [vmem:[#allocation5 + $0xa0] sm:$0xff]   ;;  %v1371_v22 = vld [vmem:[#allocation5 + $0xe8] sm:$0xff]  }
  0x62   :  { %1201 = vmatpush3.bf16.msra.mxu1 %v1356_v7  ;;  %v1372_v23 = vld [vmem:[#allocation5 + $0xa8] sm:$0xff]   ;;  %v1373_v24 = vld [vmem:[#allocation5 + $0x70] sm:$0xff]   ;;  %v1377_v28 = vld [vmem:[#allocation5 + $0x78] sm:$0xff]  }
  0x63   :  { %1202 = vmatprep.subr.bf16.mxu1 %v1359_v10  ;;  %v1374_v25 = vld [vmem:[#allocation5 + $0x30] sm:$0xff]   ;;  %v1378_v29 = vld [vmem:[#allocation5 + $0x38] sm:$0xff]   ;;  %v109_v36 = vld [vmem:[#allocation2 + $0x38] sm:$0xff] }
  0x64   :  { %1181 = vmatpush3.bf16.msra.mxu0 %v1358_v9  ;;  %v1375_v26 = vld [vmem:[#allocation5 + $0xf0] sm:$0xff]   ;;  %v1379_v30 = vld [vmem:[#allocation5 + $0xf8] sm:$0xff]   ;;  %v1381_v38 = vld [vmem:[#allocation5 + $0x140] sm:$0xff]  }
  0x65   :  { %1182 = vmatprep.subr.bf16.mxu0 %v1361_v12  ;;  %v1376_v27 = vld [vmem:[#allocation5 + $0xb0] sm:$0xff]   ;;  %v103_v31 = vld [vmem:[#allocation2 + $0x8] sm:$0xff]  ;;  %v105_v39 = vld [vmem:[#allocation2 + $0x18] sm:$0xff] }
  0x66   :  { %1203 = vmatpush3.bf16.msra.mxu1 %v1360_v11  ;;  %v110_v32 = vld [vmem:[#allocation2 + $0x40] sm:$0xff]  ;;  %v1380_v34 = vld [vmem:[#allocation5 + $0xb8] sm:$0xff]   ;;  %v112_v40 = vld [vmem:[#allocation2 + $0x50] sm:$0xff] }
  0x67   :  { %1204 = vmatprep.subr.bf16.mxu1 %v1363_v14  ;;  %v117_v33 = vpack.c.bf16 %v110_v32, %v103_v31  ;;  %v102_v35 = vld [vmem:[#allocation2] sm:$0xff]  ;;  %v119_v41 = vpack.c.bf16 %v112_v40, %v105_v39  ;;  %v1382_v42 = vld [vmem:[#allocation5 + $0x100] sm:$0xff]   ;;  %v111_v45 = vld [vmem:[#allocation2 + $0x48] sm:$0xff] }
  0x68   :  { %1183 = vmatpush3.bf16.msra.mxu0 %v1362_v13  ;;  %v116_v37 = vpack.c.bf16 %v109_v36, %v102_v35  ;;  %v104_v44 = vld [vmem:[#allocation2 + $0x10] sm:$0xff]  ;;  %v1383_v47 = vld [vmem:[#allocation5 + $0x148] sm:$0xff]   ;;  %v1385_v49 = vld [vmem:[#allocation5 + $0x150] sm:$0xff]  }
  0x69   :  { %1184 = vmatprep.subr.bf16.mxu0 %v1365_v16  ;;  %558 = vmatprep.mubr.bf16.mxu0 %v117_v33  ;;  %v118_v46 = vpack.c.bf16 %v111_v45, %v104_v44  ;;  %v1384_v48 = vld [vmem:[#allocation5 + $0x108] sm:$0xff]   ;;  %v1386_v50 = vld [vmem:[#allocation5 + $0x110] sm:$0xff]   ;;  %v1387_v51 = vld [vmem:[#allocation5 + $0x158] sm:$0xff]  }
  0x6a   :  { %1205 = vmatpush3.bf16.msra.mxu1 %v1364_v15  ;;  %599 = vmatprep.mubr.bf16.mxu1 %v119_v41  ;;  %v1388_v52 = vld [vmem:[#allocation5 + $0x118] sm:$0xff]   ;;  %v1389_v53 = vld [vmem:[#allocation5 + $0x160] sm:$0xff]   ;;  %v1391_v55 = vld [vmem:[#allocation5 + $0x168] sm:$0xff]  }
  0x6b   :  { %1206 = vmatprep.subr.bf16.mxu1 %v1367_v18  ;;  %v1390_v54 = vld [vmem:[#allocation5 + $0x120] sm:$0xff]   ;;  %v107_v57 = vld [vmem:[#allocation2 + $0x28] sm:$0xff]  ;;  %v1392_v58 = vld [vmem:[#allocation5 + $0x128] sm:$0xff]  }
  0x6c   :  { %1185 = vmatpush3.bf16.msra.mxu0 %v1366_v17  ;;  %v1397_v56 = vld [vmem:[#allocation5 + $0x180] sm:$0xff]   ;;  %v1393_v59 = vld [vmem:[#allocation5 + $0x170] sm:$0xff]   ;;  %v115_v63 = vld [vmem:[#allocation2 + $0x68] sm:$0xff] }
  0x6d   :  { %1186 = vmatprep.subr.bf16.mxu0 %v1369_v20  ;;  %v114_v60 = vld [vmem:[#allocation2 + $0x60] sm:$0xff]  ;;  %v108_v62 = vld [vmem:[#allocation2 + $0x30] sm:$0xff]  ;;  %v1395_v2 = vld [vmem:[#allocation5 + $0x178] sm:$0xff]  }
  0x6e   :  { %1207 = vmatpush3.bf16.msra.mxu1 %v1368_v19  ;;  %v121_v61 = vpack.c.bf16 %v114_v60, %v107_v57  ;;  %v122_v0 = vpack.c.bf16 %v115_v63, %v108_v62  ;;  %v1394_v1 = vld [vmem:[#allocation5 + $0x130] sm:$0xff]   ;;  %v1396_v3 = vld [vmem:[#allocation5 + $0x138] sm:$0xff]   ;;  %v113_v5 = vld [vmem:[#allocation2 + $0x58] sm:$0xff] }
  0x6f   :  { %1208 = vmatprep.subr.bf16.mxu1 %v1371_v22  ;;  %v106_v4 = vld [vmem:[#allocation2 + $0x20] sm:$0xff]  ;;  %v1398_v7 = vld [vmem:[#allocation7] sm:$0xff]   ;;  %v1400_v9 = vld [vmem:[#allocation7 + $0x10] sm:$0xff]  }
  0x70   :  { %1187 = vmatpush3.bf16.msra.mxu0 %v1370_v21  ;;  %v120_v6 = vpack.c.bf16 %v113_v5, %v106_v4  ;;  %v1399_v8 = vld [vmem:[#allocation7 + $0x8] sm:$0xff]   ;;  %v1401_v10 = vld [vmem:[#allocation7 + $0x18] sm:$0xff]   ;;  %v1402_v11 = vld [vmem:[#allocation7 + $0x20] sm:$0xff]  }
  0x71   :  { %1188 = vmatprep.subr.bf16.mxu0 %v1373_v24  ;;  %v1403_v12 = vld [vmem:[#allocation7 + $0x28] sm:$0xff]   ;;  %v1404_v13 = vld [vmem:[#allocation7 + $0x30] sm:$0xff]   ;;  %v1405_v14 = vld [vmem:[#allocation7 + $0x38] sm:$0xff]  }
  0x72   :  { %1209 = vmatpush3.bf16.msra.mxu1 %v1372_v23  ;;  %v1406_v15 = vld [vmem:[#allocation8] sm:$0xff]   ;;  %v1407_v16 = vld [vmem:[#allocation8 + $0x8] sm:$0xff]   ;;  %v1408_v17 = vld [vmem:[#allocation8 + $0x10] sm:$0xff]  }
  0x73   :  { %1210 = vmatprep.subr.bf16.mxu1 %v1375_v26  ;;  %v1409_v18 = vld [vmem:[#allocation8 + $0x18] sm:$0xff]   ;;  %v1410_v19 = vld [vmem:[#allocation8 + $0x20] sm:$0xff]   ;;  %v1411_v20 = vld [vmem:[#allocation8 + $0x28] sm:$0xff]  }
  0x74   :  { %1189 = vmatpush3.bf16.msra.mxu0 %v1374_v25  ;;  %v1089_v22 = vld [vmem:[%s1766_s2] ss:$0 sm:$0xff]  ;;  %v1413_v57 = vld [vmem:[#allocation8 + $0x38] sm:$0xff]   ;;  %v1416_v60 = vld [vmem:[#allocation10 + $0x10] sm:$0xff]  }
  0x75   :  { %1190 = vmatprep.subr.bf16.mxu0 %v1377_v28  ;;  %v1418_v62 = vld [vmem:[#allocation10 + $0x20] sm:$0xff]   ;;  %v1419_v63 = vld [vmem:[#allocation10 + $0x28] sm:$0xff]  }
  0x76   :  { %1211 = vmatpush3.bf16.msra.mxu1 %v1376_v27 }
  0x77   :  { %1212 = vmatprep.subr.bf16.mxu1 %v1379_v30 }
  0x78   :  { %1191 = vmatpush3.bf16.msra.mxu0 %v1378_v29 }
  0x79   :  { %1220 = vmatprep.subr.bf16.mxu0 %v1381_v38 }
  0x7a   :  { %1213 = vmatpush3.bf16.msra.mxu1 %v1380_v34 }
  0x7b   :  { %1271 = vmatprep.subr.bf16.mxu1 %v1579_v43  ;;  %559 = vmatmul.mubr.bf16.vlgmr.msra.gmra.mrb[0].mxu0 %v116_v37 }
  0x7c   :  { %1221 = vmatpush3.bf16.msra.mxu0 %v1382_v42  ;;  %640 = vmatprep.mubr.bf16.mxu0 %v121_v61  ;;  %v1417_v61 = vld [vmem:[#allocation10 + $0x18] sm:$0xff]  }
  0x7d   :  { %600 = vmatmul.mubr.bf16.vlgmr.msra.gmra.mrb[0].mxu1 %v118_v46  ;;  %1222 = vmatprep.subr.bf16.mxu0 %v1383_v47 }
  0x7e   :  { %1273 = vmatprep.mubr.msk.bf16.mxu1 %vm1580_vm0, %v1579_v43  ;;  %1272 = vmatpush3.bf16.msra.mxu1 %v1397_v56  ;;  %v1412_v56 = vld [vmem:[#allocation8 + $0x30] sm:$0xff]  }
  0x7f   :  { %1277 = vmatprep.subr.bf16.mxu1 %v1579_v43 }
  0x80   :  { %1223 = vmatpush3.bf16.msra.mxu0 %v1384_v48 }
  0x81   :  { %1224 = vmatprep.subr.bf16.mxu0 %v1385_v49 }
  0x84   :  { %1225 = vmatpush3.bf16.msra.mxu0 %v1386_v50 }
  0x85   :  { %1226 = vmatprep.subr.bf16.mxu0 %v1387_v51  ;;  %1274 = vmatmul.mubr.msk.bf16.vlgmr.msra.gmra.mrb[4].mxu1 %vm522_vm1, %v122_v0  ;;  %v1140_v0 = vld [vmem:[%s1768_s4] ss:$0 sm:$0xff] }
  0x86   :  { %1293 = vmatprep.mubr.msk.bf16.mxu1 %vm1580_vm0, %v1579_v43  ;;  %1278 = vmatpush3.bf16.msra.mxu1 %v1398_v7 }
  0x87   :  { %1279 = vmatprep.subr.bf16.mxu1 %v1579_v43 }
  0x88   :  { %1227 = vmatpush3.bf16.msra.mxu0 %v1388_v52 }
  0x89   :  { %1228 = vmatprep.subr.bf16.mxu0 %v1389_v53 }
  0x8a   :  { %1280 = vmatpush3.bf16.msra.mxu1 %v1399_v8 }
  0x8b   :  { %1281 = vmatprep.subr.bf16.mxu1 %v1579_v43 }
  0x8c   :  { %1229 = vmatpush3.bf16.msra.mxu0 %v1390_v54 }
  0x8d   :  { %1230 = vmatprep.subr.bf16.mxu0 %v1391_v55 }
  0x8e   :  { %1282 = vmatpush3.bf16.msra.mxu1 %v1400_v9 }
  0x8f   :  { %1283 = vmatprep.subr.bf16.mxu1 %v1579_v43 }
  0x90   :  { %1231 = vmatpush3.bf16.msra.mxu0 %v1392_v58  ;;  %v1414_v58 = vld [vmem:[#allocation10] sm:$0xff]  }
  0x91   :  { %1232 = vmatprep.subr.bf16.mxu0 %v1393_v59  ;;  %v1415_v59 = vld [vmem:[#allocation10 + $0x8] sm:$0xff]  }
  0x92   :  { %1284 = vmatpush3.bf16.msra.mxu1 %v1401_v10  ;;  %v1420_v10 = vld [vmem:[#allocation10 + $0x30] sm:$0xff]  }
  0x93   :  { %1285 = vmatprep.subr.bf16.mxu1 %v1579_v43 }
  0x94   :  { %1233 = vmatpush3.bf16.msra.mxu0 %v1394_v1 }
  0x95   :  { %1234 = vmatprep.subr.bf16.mxu0 %v1395_v2 }
  0x96   :  { %1286 = vmatpush3.bf16.msra.mxu1 %v1402_v11  ;;  %v1421_v11 = vld [vmem:[#allocation10 + $0x38] sm:$0xff]  }
  0x97   :  { %1287 = vmatprep.subr.bf16.mxu1 %v1579_v43 }
  0x98   :  { %1235 = vmatpush3.bf16.msra.mxu0 %v1396_v3 }
  0x99   :  { %1297 = vmatprep.subr.bf16.mxu0 %v1579_v43 }
  0x9a   :  { %1288 = vmatpush3.bf16.msra.mxu1 %v1403_v12  ;;  %v1149_v12 = vld [vmem:[%s1770_s6] ss:$0 sm:$0xff]  ;;  %s1581_s6 = smov [#allocation11]  }
  0x9b   :  { %641 = vmatmul.mubr.bf16.vlgmr.msra.gmra.mrb[4].mxu0 %v120_v6  ;;  %1289 = vmatprep.subr.bf16.mxu1 %v1579_v43 }
  0x9c   :  { %1313 = vmatprep.mubr.msk.bf16.mxu0 %vm1580_vm0, %v1579_v43  ;;  %1298 = vmatpush3.bf16.msra.mxu0 %v1406_v15 }
  0x9d   :  { %1299 = vmatprep.subr.bf16.mxu0 %v1579_v43 }
  0x9e   :  { %1290 = vmatpush3.bf16.msra.mxu1 %v1404_v13 }
  0x9f   :  { %1291 = vmatprep.subr.bf16.mxu1 %v1579_v43 }
  0xa0   :  { %1300 = vmatpush3.bf16.msra.mxu0 %v1407_v16 }
  0xa1   :  { %1301 = vmatprep.subr.bf16.mxu0 %v1579_v43 }
  0xa2   :  { %1292 = vmatpush3.bf16.msra.mxu1 %v1405_v14 }
  0xa3   :  { %1317 = vmatprep.subr.bf16.mxu1 %v1579_v43 }
  0xa4   :  { %1302 = vmatpush3.bf16.msra.mxu0 %v1408_v17 }
  0xa5   :  { %1303 = vmatprep.subr.bf16.mxu0 %v1579_v43 }
  0xa8   :  { %1304 = vmatpush3.bf16.msra.mxu0 %v1409_v18 }
  0xa9   :  { %1305 = vmatprep.subr.bf16.mxu0 %v1579_v43 }
  0xac   :  { %1306 = vmatpush3.bf16.msra.mxu0 %v1410_v19 }
  0xad   :  { %1307 = vmatprep.subr.bf16.mxu0 %v1579_v43 }
  0xb0   :  { %1308 = vmatpush3.bf16.msra.mxu0 %v1411_v20 }
  0xb1   :  { %1309 = vmatprep.subr.bf16.mxu0 %v1579_v43 }
  0xb4   :  { %1310 = vmatpush3.bf16.msra.mxu0 %v1412_v56 }
  0xb5   :  { %1311 = vmatprep.subr.bf16.mxu0 %v1579_v43 }
  0xb8   :  { %1312 = vmatpush3.bf16.msra.mxu0 %v1413_v57 }
 0x14e   :  { %v1192_v21 = vpop.f32.mrb[0].mxu0 }
 0x14f   :  { %v1193_v23 = vpop.f32.mrb[1].mxu0 }
 0x150   :  { %v1194_v24 = vadd.f32 %v1193_v23, %v1192_v21  ;;  %v1195_v25 = vpop.f32.mrb[2].mxu0  ;;  %v1214_v26 = vpop.f32.mrb[0].mxu1 }
 0x151   :  { %v1196_v27 = vpop.f32.mrb[3].mxu0  ;;  %v1215_v30 = vpop.f32.mrb[1].mxu1 }
 0x152   :  { %v561_v28 = vadd.f32 %v1194_v24, %v1089_v22  ;;  %v1197_v29 = vadd.f32 %v1196_v27, %v1195_v25  ;;  %v1216_v31 = vadd.f32 %v1215_v30, %v1214_v26  ;;  %v1217_v32 = vpop.f32.mrb[2].mxu1 }
 0x153   :  { %v1218_v34 = vpop.f32.mrb[3].mxu1 }
 0x154   :  { %v564_v33 = vadd.f32 %v1197_v29, %v1089_v22  ;;  %v602_v35 = vadd.f32 %v1216_v31, %v561_v28  ;;  %v1219_v36 = vadd.f32 %v1218_v34, %v1217_v32  ;;  %v1035_v22 = vlaneseq }
 0x156   :  { %v605_v37 = vadd.f32 %v1219_v36, %v564_v33  ;;  %v1036_v23 = vand.u32 127, %v1035_v22 }
 0x158   :  { %v683_v38 = vpop.f32.mrb[4].mxu1  ;;  %vm1037_vm2 = vcmp.lt.s32.totalorder %v1036_v23, 10 }
 0x159   :  { %v1275_v39 = vpop.f32.mrb[5].mxu1 }
 0x15a   :  { %v686_v40 = vpop.f32.mrb[6].mxu1 }
 0x15b   :  { %v1276_v41 = vpop.f32.mrb[7].mxu1 }
 0x16e   :  { %v1236_v42 = vpop.f32.mrb[4].mxu0 }
 0x16f   :  { %v1237_v44 = vpop.f32.mrb[5].mxu0 }
 0x170   :  { %v1238_v45 = vadd.f32 %v1237_v44, %v1236_v42  ;;  %v1239_v46 = vpop.f32.mrb[6].mxu0 }
 0x171   :  { %v1240_v47 = vpop.f32.mrb[7].mxu0 }
 0x172   :  { %v643_v48 = vadd.f32 %v1238_v45, %v602_v35  ;;  %v1241_v49 = vadd.f32 %v1240_v47, %v1239_v46 }
 0x174   :  { %v684_v50 = vadd.f32 %v683_v38, %v643_v48  ;;  %v646_v51 = vadd.f32 %v1241_v49, %v605_v37 }
 0x176   :  { %v687_v52 = vadd.f32 %v686_v40, %v646_v51  ;;  %v690_v53 = vmax.f32 %v684_v50, 0.0 }
 0x178   :  { %v691_v54 = vmax.f32 %v687_v52, 0.0 }
 0x17a   :  { %v692_v55 = vpack.c.bf16 %v691_v54, %v690_v53 }
 0x17c   :  { %1294 = vmatmul.mubr.bf16.vlgmr.msra.gmra.mrb[8].mxu1 %v692_v55 }
 0x17d   :  { %1333 = vmatprep.mubr.msk.bf16.mxu1 %vm1580_vm0, %v1579_v43  ;;  %1318 = vmatpush3.bf16.msra.mxu1 %v1414_v58 }
 0x17e   :  { %1319 = vmatprep.subr.bf16.mxu1 %v1579_v43 }
 0x181   :  { %1320 = vmatpush3.bf16.msra.mxu1 %v1415_v59 }
 0x182   :  { %1321 = vmatprep.subr.bf16.mxu1 %v1579_v43 }
 0x185   :  { %1322 = vmatpush3.bf16.msra.mxu1 %v1416_v60 }
 0x186   :  { %1323 = vmatprep.subr.bf16.mxu1 %v1579_v43 }
 0x189   :  { %1324 = vmatpush3.bf16.msra.mxu1 %v1417_v61 }
 0x18a   :  { %1325 = vmatprep.subr.bf16.mxu1 %v1579_v43 }
 0x18d   :  { %1326 = vmatpush3.bf16.msra.mxu1 %v1418_v62 }
 0x18e   :  { %1327 = vmatprep.subr.bf16.mxu1 %v1579_v43 }
 0x191   :  { %1328 = vmatpush3.bf16.msra.mxu1 %v1419_v63 }
 0x192   :  { %1329 = vmatprep.subr.bf16.mxu1 %v1579_v43 }
 0x195   :  { %1330 = vmatpush3.bf16.msra.mxu1 %v1420_v10 }
 0x196   :  { %1331 = vmatprep.subr.bf16.mxu1 %v1579_v43  ;;  %v1158_v43 = vld [vmem:[%s1772_s8] ss:$0 sm:$0xff]  ;;  %s1075_s8 = sshll.u32 %s1581_s6, 4  ;;  %s1076_s8 = int_to_ptr.vmem [resolvable:$true] %s1075_s8 }
 0x197   :  { %s1540_s10 = scalar_lea.vmem %s1076_s8, 128  ;;  %p1545_p13 = scmp.lt.s32.totalorder %s1076_s8, %s1076_s8 }
 0x198   :  { %p1541_p12 = scmp.ne.s32.totalorder %s1076_s8, %s1540_s10  ;;  %p1546_p0 = scmp.lt.s32.totalorder %s1540_s10, %s1540_s10 }
 0x199   :  { %1332 = vmatpush3.bf16.msra.mxu1 %v1421_v11 }
 0x19a   :  { %p1547_p1 = por %p1546_p0, %p1545_p13 }
 0x19c   :  { %p1548_p2 = pnand %p1547_p1, %p1541_p12 }
 0x24f   :  { %v798_v1 = vpop.f32.mrb[8].mxu1 }
 0x250   :  { %v799_v2 = vadd.f32 %v1140_v0, %v798_v1  ;;  %v1295_v3 = vpop.f32.mrb[9].mxu1 }
 0x251   :  { %v801_v4 = vpop.f32.mrb[10].mxu1 }
 0x252   :  { %v802_v5 = vadd.f32 %v1140_v0, %v801_v4  ;;  %v1296_v6 = vpop.f32.mrb[11].mxu1  ;;  %v805_v7 = vmax.f32 %v799_v2, 0.0 }
 0x254   :  { %v806_v8 = vmax.f32 %v802_v5, 0.0 }
 0x256   :  { %v807_v9 = vpack.c.bf16 %v806_v8, %v805_v7 }
 0x258   :  { %1314 = vmatmul.mubr.bf16.vlgmr.msra.gmra.mrb[8].mxu0 %v807_v9 }
 0x32b   :  { %v913_v13 = vpop.f32.mrb[8].mxu0 }
 0x32c   :  { %v914_v14 = vadd.f32 %v1149_v12, %v913_v13  ;;  %v1315_v15 = vpop.f32.mrb[9].mxu0 }
 0x32d   :  { %v916_v16 = vpop.f32.mrb[10].mxu0 }
 0x32e   :  { %v917_v17 = vadd.f32 %v1149_v12, %v916_v16  ;;  %v1316_v18 = vpop.f32.mrb[11].mxu0  ;;  %v920_v19 = vmax.f32 %v914_v14, 0.0 }
 0x330   :  { %v921_v20 = vmax.f32 %v917_v17, 0.0 }
 0x332   :  { %v922_v21 = vpack.c.bf16 %v921_v20, %v920_v19 }
 0x334   :  { %1334 = vmatmul.mubr.bf16.vlgmr.msra.gmra.mrb[12].mxu1 %v922_v21 }
 0x407   :  { %v1028_v24 = vpop.f32.mrb[12].mxu1 }
 0x408   :  { %v1029_v25 = vadd.f32 %v1158_v43, %v1028_v24  ;;  %v1335_v26 = vpop.f32.mrb[13].mxu1 }
 0x409   :  { %v1031_v27 = vpop.f32.mrb[14].mxu1 }
 0x40a   :  { %v1032_v28 = vadd.f32 %v1158_v43, %v1031_v27  ;;  %v1336_v29 = vpop.f32.mrb[15].mxu1  ;;  %v1038_v30 = vsel %vm1037_vm2, %v1029_v25, -1e+30 }
 0x40b   :  { %1040 = vmax.xlane.f32.xlu0 %v1038_v30 }
 0x40c   :  { %v1039_v31 = vsel %vm1037_vm2, %v1032_v28, -1e+30 }
 0x40f   :  { %1042 = vmax.xlane.f32.xlu0 %v1039_v31 }
 0x498   :  { %v1041_v32 = vpop.xlane.xlu0 %1040 }
 0x499   :  { %v1044_v33 = vsub.f32 %v1038_v30, %v1041_v32 }
 0x49b   :  { %v1046_v34 = vmul.f32 1.442695, %v1044_v33 }
 0x49c   :  { %v1043_v35 = vpop.xlane.xlu0 %1042 }
 0x49d   :  { %v1045_v36 = vsub.f32 %v1039_v31, %v1043_v35  ;;  %1422 = vpow2.f32 %v1046_v34 }
 0x49f   :  { %v1048_v37 = vmul.f32 1.442695, %v1045_v36 }
 0x4a1   :  { %1424 = vpow2.f32 %v1048_v37 }
 0x4a7   :  { %v1423_v38 = vpop.eup %1422 }
 0x4a8   :  { %1050 = vadd.xlane.f32.xlu1 %v1423_v38 }
 0x4ab   :  { %v1425_v39 = vpop.eup %1424 }
 0x4ac   :  { %1052 = vadd.xlane.f32.xlu1 %v1425_v39 }
 0x535   :  { %v1051_v40 = vpop.xlane.xlu1 %1050 }
 0x536   :  { %1426 = vlog2.f32 %v1051_v40 }
 0x539   :  { %v1053_v41 = vpop.xlane.xlu1 %1052 }
 0x53a   :  { %1428 = vlog2.f32 %v1053_v41 }
 0x540   :  { %v1427_v42 = vpop.eup %1426 }
 0x541   :  { %v1055_v44 = vmul.f32 0.6931472, %v1427_v42 }
 0x543   :  { %v1058_v47 = vsub.f32 %v1044_v33, %v1055_v44 }
 0x544   :  { %v1429_v45 = vpop.eup %1428 }
 0x545   :  { %v1057_v46 = vmul.f32 0.6931472, %v1429_v45 }
 0x547   :  { %v1059_v48 = vsub.f32 %v1045_v36, %v1057_v46 }
 0x549   :  { %v1174_v49 = vpack.c.bf16 %v1059_v48, %v1058_v47 }
 0x54b   :  { %1175 = vst [vmem:[#allocation11] sm:$0xff] %v1174_v49  }
 0x54c   :  { %1551 = shalt.err (!%p1548_p2)
}
 0x54d   :  { %s1552_s16 = scalar_lea.hbm %s1773_s9, 128 }
 0x54e   :  { %p1553_p3 = scmp.ne.s32.totalorder %s1773_s9, %s1552_s16  ;;  %p1556_p4 = scmp.lt.u32.totalorder %s1552_s16, %s1773_s9 }
 0x550   :  { %p1558_p5 = pnand %p1556_p4, %p1553_p3 }
 0x552   :  { %1561 = shalt.err (!%p1558_p5)
}
 0x553   :  { %1081 = dma.vmem_to_hbm [thread:$0]  %s1076_s8, 128, %s1773_s9, [#allocation4], %s1571_s19, %s1571_s19, %s1572_s20  }
 0x554   :  { %1568 = dma.done.wait [#allocation4], 128  }
 0x555   :  { %1569 = vsyncadd [#allocation4], 4294967168 }
 0x556   :  { %1085 = vsyncpa [#allocation3], 1 }
 0x557   :  { %1086 = vsyncpa [#allocation6], 1 }
 0x558   :  { %1087 = vsyncpa [#allocation9], 1 }
 0x559   :  { %1088 = vsyncpa [#allocation4], 1 }

</bundles_post_ra>
